<compile_context>
chip_gen: v5e
topology: v5e:2x2
jax: 0.10.0
libtpu: 0.0.40
codegen_flags: <defaults>
</compile_context>

<pallas_src>
import jax
import jax.numpy as jnp
from jax import lax
from jax.experimental import pallas as pl
from jax.experimental.pallas import tpu as pltpu

STATE_DIM = 7                     # input / output state dimension
RES_OUT = 4                       # residual MLP output dim (rest is zero)
HIDDEN = 32                       # res_mlp_size
PAD_OUT = 8                       # base/residual rows padded 7 -> 8 (sublane aligned)
FUSED_ROWS = HIDDEN + PAD_OUT     # 40: [W1 | A_pad] fused along the output dim
TILE_B_MAX = 8192                 # default batch tile (lanes of the compute layout)


def _cdiv(a, b):
    return -(-a // b)


def _round_up(n, m):
    return _cdiv(n, m) * m


def _pick_tile(batch, tile_max):
    """Adaptive batch tile: multiple of 128, >=2 grid steps when worthwhile
    (v7x megacore), pad waste bounded by <128 rows per tile."""
    tile_max = max(128, min(_round_up(tile_max, 128), 8192))
    if batch <= tile_max:
        n = 1 if batch <= 1024 else 2
    else:
        n = max(_cdiv(batch, tile_max), 2)
    return max(128, _round_up(_cdiv(max(batch, 1), n), 128))


def _residual_model_kernel(x_ref, wf_ref, bf_ref, w2_ref, b2_ref,
                           w3_ref, b3_ref, o_ref):
    x_blk = x_ref[...]                                             # (TB, 7) f32, natural layout

    # Fused [W1 | A_pad] first layer + base dynamics in one MXU pass.
    # Contract both minor (feature) dims -> lane-dense (40, TB) output with the
    # batch on the 128-lane axis, without an explicit input transpose.
    fused = lax.dot_general(
        wf_ref[...], x_blk,
        dimension_numbers=(((1,), (1,)), ((), ())),
        preferred_element_type=jnp.float32) + bf_ref[...]          # (40, TB)

    base = fused[HIDDEN:, :]                                       # (8, TB), row 7 == 0
    cdt = w2_ref.dtype                                             # bf16 on v6e/v7x, f32 on v5e

    # Residual MLP (EUP tanh in bf16 where supported; f32 accumulate matmuls).
    h = jnp.tanh(fused[:HIDDEN, :].astype(cdt))                    # (32, TB)
    h = jnp.tanh((jnp.dot(w2_ref[...], h,
                          preferred_element_type=jnp.float32)
                  + b2_ref[...]).astype(cdt))                      # (32, TB)
    res = (jnp.dot(w3_ref[...], h, preferred_element_type=jnp.float32)
           + b3_ref[...] + base)                                   # (8, TB) f32

    # Back to natural (batch, feature) layout on the otherwise-idle XLU and
    # store; the padded 8th feature row is dropped.
    o_ref[...] = jnp.transpose(res)[:, :STATE_DIM]                 # (TB, 7)


def make_params(key):
    """Deterministic parameter init (PyTorch Linear-like uniform bounds).
    Weights stored (in, out), biases (1, out)."""
    ks = jax.random.split(key, 8)

    def linear(kw, kb, fan_in, fan_out):
        bound = 1.0 / jnp.sqrt(fan_in)
        w = jax.random.uniform(kw, (fan_in, fan_out), jnp.float32, -bound, bound)
        b = jax.random.uniform(kb, (1, fan_out), jnp.float32, -bound, bound)
        return w, b

    w1, b1 = linear(ks[0], ks[1], STATE_DIM, HIDDEN)   # Linear(7, 32)
    w2, b2 = linear(ks[2], ks[3], HIDDEN, HIDDEN)      # Linear(32, 32)
    w3, b3 = linear(ks[4], ks[5], HIDDEN, RES_OUT)     # Linear(32, 4)
    # base linear dynamics model params: f(t, x) = x @ A + t * c
    a = 0.1 * jax.random.normal(ks[6], (STATE_DIM, STATE_DIM), jnp.float32)
    c = 0.1 * jax.random.normal(ks[7], (1, STATE_DIM), jnp.float32)
    return dict(w1=w1, b1=b1, w2=w2, b2=b2, w3=w3, b3=b3, a=a, c=c)


def _use_bf16_default():
    kind = jax.devices()[0].device_kind.lower()
    return ("v6" in kind) or ("v7" in kind) or ("7x" in kind)


def prepare_weights(params, use_bf16_tanh=None):
    """Per-parameter-set prep, hoisted out of the hot path (only the fused bias
    depends on t).  bf16 MLP weights only where the chip has a bf16 EUP/VPU."""
    if use_bf16_tanh is None:
        use_bf16_tanh = _use_bf16_default()
    mlp_dtype = jnp.bfloat16 if use_bf16_tanh else jnp.float32

    a_pad = jnp.pad(params["a"], ((0, 0), (0, PAD_OUT - STATE_DIM)))        # (7, 8)
    wf = jnp.concatenate([params["w1"], a_pad], axis=1).T                   # (40, 7)
    w3_pad = jnp.pad(params["w3"], ((0, 0), (0, PAD_OUT - RES_OUT)))        # (32, 8)
    b3_pad = jnp.pad(params["b3"], ((0, 0), (0, PAD_OUT - RES_OUT)))        # (1, 8)
    return dict(
        wf=wf.astype(jnp.float32),                    # (40, 7) fused [W1 | A_pad], f32
        b1t=params["b1"].T.astype(jnp.float32),       # (32, 1)
        ct=params["c"].T.astype(jnp.float32),         # (7, 1)
        w2t=params["w2"].T.astype(mlp_dtype),         # (32, 32)
        b2t=params["b2"].T.astype(jnp.float32),       # (32, 1)
        w3t=w3_pad.T.astype(mlp_dtype),               # (8, 32), rows 4..7 zero
        b3t=b3_pad.T.astype(jnp.float32),             # (8, 1),  rows 4..7 zero
    )


def residual_neural_model(t, x, params=None, *, prepped=None,
                          tile_b_max=TILE_B_MAX, use_bf16_tanh=None):
    """t: scalar, x: (B, 7) float32 -> (B, 7) float32."""
    if prepped is None:
        prepped = prepare_weights(params, use_bf16_tanh)

    B = x.shape[0]
    tile_b = _pick_tile(B, tile_b_max)
    # Large batches are consumed in their natural (B, 7) layout with no wrapper
    # pad/transpose (partial final block handled by Pallas masking).  Only tiny
    # batches (less than one tile) are padded, where the cost is negligible.
    if B < tile_b:
        x = jnp.pad(x, ((0, tile_b - B), (0, 0)))
    b_run = x.shape[0]
    num_tiles = _cdiv(b_run, tile_b)

    # Only the fused bias depends on t:  bf = [b1 ; t*c ; 0]  -> (40, 1).
    t_f32 = jnp.asarray(t, jnp.float32)
    bf = jnp.concatenate(
        [prepped["b1t"], t_f32 * prepped["ct"], jnp.zeros((1, 1), jnp.float32)],
        axis=0)

    io_spec = pl.BlockSpec((tile_b, STATE_DIM), lambda i: (i, 0))

    def full_spec(arr):
        return pl.BlockSpec(arr.shape, lambda i: (0, 0))

    # Natural-layout (tile_b, 7) I/O tiles are lane-padded to 128 in VMEM
    # (tile_b * 512 B each, double-buffered); size the scoped-VMEM limit
    # explicitly so large tiles don't trip the v5e 16 MiB default.
    io_tile_bytes = tile_b * 512
    est = (6 * io_tile_bytes
           + (FUSED_ROWS + 2 * HIDDEN + PAD_OUT) * tile_b * 4
           + (2 << 20))
    vmem_limit = int(min(60 << 20, max(32 << 20, int(est * 1.5))))

    out = pl.pallas_call(
        _residual_model_kernel,
        out_shape=jax.ShapeDtypeStruct((b_run, STATE_DIM), jnp.float32),
        grid=(num_tiles,),
        in_specs=[io_spec,
                  full_spec(prepped["wf"]), full_spec(bf),
                  full_spec(prepped["w2t"]), full_spec(prepped["b2t"]),
                  full_spec(prepped["w3t"]), full_spec(prepped["b3t"])],
        out_specs=io_spec,
        compiler_params=pltpu.CompilerParams(
            dimension_semantics=("parallel",),
            vmem_limit_bytes=vmem_limit),
    )(x, prepped["wf"], bf, prepped["w2t"], prepped["b2t"],
      prepped["w3t"], prepped["b3t"])

    return out[:B] if b_run != B else out


def _reference(t, x, p):
    """Plain-JAX reference mirroring the PyTorch forward."""
    h = jnp.tanh(x @ p["w1"] + p["b1"])
    h = jnp.tanh(h @ p["w2"] + p["b2"])
    res = h @ p["w3"] + p["b3"]                                    # (B, 4)
    res = jnp.concatenate(
        [res, jnp.zeros(x.shape[:-1] + (STATE_DIM - RES_OUT,), x.dtype)], axis=-1)
    base = x @ p["a"] + jnp.float32(t) * p["c"]
    return res + base


if __name__ == "__main__":
    key = jax.random.PRNGKey(0)
    kp, kx, kx2 = jax.random.split(key, 3)

    params = make_params(kp)
    t = 0.5

    # Small batch, single tile.
    B = 8
    x = jax.random.normal(kx, (B, STATE_DIM), jnp.float32)
    ref = _reference(t, x, params)

    # Exact-precision path (f32 tanh everywhere, matches reference tightly).
    out_f32 = residual_neural_model(t, x, params, use_bf16_tanh=False)
    jax.block_until_ready(out_f32)
    assert out_f32.shape == (B, STATE_DIM)
    assert jnp.allclose(out_f32, ref, atol=1e-4, rtol=1e-4)

    # Auto path (bf16 tanh on v6e/v7x, f32 elsewhere) -> looser tolerance.
    out_auto = residual_neural_model(t, x, params)
    jax.block_until_ready(out_auto)
    assert jnp.allclose(out_auto, ref, atol=5e-2, rtol=5e-2)

    # Multi-tile grid with a partial final block, using hoisted weight prep.
    B2 = 300
    x2 = jax.random.normal(kx2, (B2, STATE_DIM), jnp.float32)
    prepped = prepare_weights(params, use_bf16_tanh=False)
    out2 = residual_neural_model(t, x2, prepped=prepped, tile_b_max=128)
    jax.block_until_ready(out2)
    ref2 = _reference(t, x2, params)
    assert out2.shape == (B2, STATE_DIM)
    assert jnp.allclose(out2, ref2, atol=1e-4, rtol=1e-4)

    print("KERNEL_OK")
</pallas_src>

<mosaic_0001>
module attributes {stable_mosaic.version = 11 : i64} {
  func.func @_residual_model_kernel(%arg0: i32, %arg1: memref<128x7xf32, #tpu.memory_space<vmem>>, %arg2: memref<40x7xf32, #tpu.memory_space<vmem>>, %arg3: memref<40x1xf32, #tpu.memory_space<vmem>>, %arg4: memref<32x32xf32, #tpu.memory_space<vmem>>, %arg5: memref<32x1xf32, #tpu.memory_space<vmem>>, %arg6: memref<8x32xf32, #tpu.memory_space<vmem>>, %arg7: memref<8x1xf32, #tpu.memory_space<vmem>>, %arg8: memref<128x7xf32, #tpu.memory_space<vmem>>) attributes {dimension_semantics = [#tpu.dimension_semantics<parallel>], iteration_bounds = array<i64: 1>, scalar_prefetch = 0 : i64, scratch_operands = 0 : i64, tpu.core_type = #tpu.core_type<tc>, window_params = [{transform_indices = @transform_0, window_bounds = array<i64: 128, 7>}, {pipeline_mode = #tpu.pipeline_mode<synchronous>, transform_indices = @transform_1, window_bounds = array<i64: 40, 7>}, {pipeline_mode = #tpu.pipeline_mode<synchronous>, transform_indices = @transform_2, window_bounds = array<i64: 40, 1>}, {pipeline_mode = #tpu.pipeline_mode<synchronous>, transform_indices = @transform_3, window_bounds = array<i64: 32, 32>}, {pipeline_mode = #tpu.pipeline_mode<synchronous>, transform_indices = @transform_4, window_bounds = array<i64: 32, 1>}, {pipeline_mode = #tpu.pipeline_mode<synchronous>, transform_indices = @transform_5, window_bounds = array<i64: 8, 32>}, {pipeline_mode = #tpu.pipeline_mode<synchronous>, transform_indices = @transform_6, window_bounds = array<i64: 8, 1>}, {transform_indices = @transform_7, window_bounds = array<i64: 128, 7>}]} {
    %c0 = arith.constant 0 : index
    %c0_0 = arith.constant 0 : index
    %0 = vector.load %arg1[%c0, %c0_0] : memref<128x7xf32, #tpu.memory_space<vmem>>, vector<128x7xf32>
    %c0_1 = arith.constant 0 : index
    %c0_2 = arith.constant 0 : index
    %1 = vector.load %arg2[%c0_1, %c0_2] : memref<40x7xf32, #tpu.memory_space<vmem>>, vector<40x7xf32>
    %cst = arith.constant dense<0.000000e+00> : vector<40x128xf32>
    %2 = tpu.matmul %1, %0, %cst {dimension_numbers = #tpu.dot_dimension_numbers<[1], [1], [0], [0], [0, 0, 1, 0], [], []>} : vector<40x7xf32>, vector<128x7xf32>, vector<40x128xf32> -> vector<40x128xf32>
    %c0_3 = arith.constant 0 : index
    %c0_4 = arith.constant 0 : index
    %3 = vector.load %arg3[%c0_3, %c0_4] : memref<40x1xf32, #tpu.memory_space<vmem>>, vector<40x1xf32>
    %4 = vector.broadcast %3 : vector<40x1xf32> to vector<40x128xf32>
    %5 = arith.addf %2, %4 : vector<40x128xf32>
    %6 = vector.extract_strided_slice %5 {offsets = [32, 0], sizes = [8, 128], strides = [1, 1]} : vector<40x128xf32> to vector<8x128xf32>
    %7 = vector.extract_strided_slice %5 {offsets = [0, 0], sizes = [32, 128], strides = [1, 1]} : vector<40x128xf32> to vector<32x128xf32>
    %8 = math.tanh %7 : vector<32x128xf32>
    %c0_5 = arith.constant 0 : index
    %c0_6 = arith.constant 0 : index
    %9 = vector.load %arg4[%c0_5, %c0_6] : memref<32x32xf32, #tpu.memory_space<vmem>>, vector<32x32xf32>
    %cst_7 = arith.constant dense<0.000000e+00> : vector<32x128xf32>
    %10 = tpu.matmul %9, %8, %cst_7 {dimension_numbers = #tpu.dot_dimension_numbers<[1], [0], [0], [1], [0, 0, 1, 1], [], []>} : vector<32x32xf32>, vector<32x128xf32>, vector<32x128xf32> -> vector<32x128xf32>
    %c0_8 = arith.constant 0 : index
    %c0_9 = arith.constant 0 : index
    %11 = vector.load %arg5[%c0_8, %c0_9] : memref<32x1xf32, #tpu.memory_space<vmem>>, vector<32x1xf32>
    %12 = vector.broadcast %11 : vector<32x1xf32> to vector<32x128xf32>
    %13 = arith.addf %10, %12 : vector<32x128xf32>
    %14 = math.tanh %13 : vector<32x128xf32>
    %c0_10 = arith.constant 0 : index
    %c0_11 = arith.constant 0 : index
    %15 = vector.load %arg6[%c0_10, %c0_11] : memref<8x32xf32, #tpu.memory_space<vmem>>, vector<8x32xf32>
    %cst_12 = arith.constant dense<0.000000e+00> : vector<8x128xf32>
    %16 = tpu.matmul %15, %14, %cst_12 {dimension_numbers = #tpu.dot_dimension_numbers<[1], [0], [0], [1], [0, 0, 1, 1], [], []>} : vector<8x32xf32>, vector<32x128xf32>, vector<8x128xf32> -> vector<8x128xf32>
    %c0_13 = arith.constant 0 : index
    %c0_14 = arith.constant 0 : index
    %17 = vector.load %arg7[%c0_13, %c0_14] : memref<8x1xf32, #tpu.memory_space<vmem>>, vector<8x1xf32>
    %18 = vector.broadcast %17 : vector<8x1xf32> to vector<8x128xf32>
    %19 = arith.addf %16, %18 : vector<8x128xf32>
    %20 = arith.addf %19, %6 : vector<8x128xf32>
    %21 = tpu.transpose %20, [1, 0] : vector<8x128xf32> -> vector<128x8xf32>
    %22 = vector.extract_strided_slice %21 {offsets = [0, 0], sizes = [128, 7], strides = [1, 1]} : vector<128x8xf32> to vector<128x7xf32>
    %c0_15 = arith.constant 0 : index
    %c0_16 = arith.constant 0 : index
    %23 = vector.load %arg8[%c0_15, %c0_16] : memref<128x7xf32, #tpu.memory_space<vmem>>, vector<128x7xf32>
    tpu.vector_store %arg8[%c0_15, %c0_16], %22 {strides = array<i32>} : memref<128x7xf32, #tpu.memory_space<vmem>>, vector<128x7xf32>,
    return
  }
  func.func @transform_0(%arg0: i32) -> (i32, i32) {
    %c0_i32 = arith.constant 0 : i32
    %c0_i32_0 = arith.constant 0 : i32
    return %arg0, %c0_i32 : i32, i32
  }
  func.func @transform_1(%arg0: i32) -> (i32, i32) {
    %c0_i32 = arith.constant 0 : i32
    %c0_i32_0 = arith.constant 0 : i32
    %c0_i32_1 = arith.constant 0 : i32
    return %c0_i32, %c0_i32_0 : i32, i32
  }
  func.func @transform_2(%arg0: i32) -> (i32, i32) {
    %c0_i32 = arith.constant 0 : i32
    %c0_i32_0 = arith.constant 0 : i32
    %c0_i32_1 = arith.constant 0 : i32
    return %c0_i32, %c0_i32_0 : i32, i32
  }
  func.func @transform_3(%arg0: i32) -> (i32, i32) {
    %c0_i32 = arith.constant 0 : i32
    %c0_i32_0 = arith.constant 0 : i32
    %c0_i32_1 = arith.constant 0 : i32
    return %c0_i32, %c0_i32_0 : i32, i32
  }
  func.func @transform_4(%arg0: i32) -> (i32, i32) {
    %c0_i32 = arith.constant 0 : i32
    %c0_i32_0 = arith.constant 0 : i32
    %c0_i32_1 = arith.constant 0 : i32
    return %c0_i32, %c0_i32_0 : i32, i32
  }
  func.func @transform_5(%arg0: i32) -> (i32, i32) {
    %c0_i32 = arith.constant 0 : i32
    %c0_i32_0 = arith.constant 0 : i32
    %c0_i32_1 = arith.constant 0 : i32
    return %c0_i32, %c0_i32_0 : i32, i32
  }
  func.func @transform_6(%arg0: i32) -> (i32, i32) {
    %c0_i32 = arith.constant 0 : i32
    %c0_i32_0 = arith.constant 0 : i32
    %c0_i32_1 = arith.constant 0 : i32
    return %c0_i32, %c0_i32_0 : i32, i32
  }
  func.func @transform_7(%arg0: i32) -> (i32, i32) {
    %c0_i32 = arith.constant 0 : i32
    %c0_i32_0 = arith.constant 0 : i32
    return %arg0, %c0_i32 : i32, i32
  }
}

</mosaic_0001>

<bundles_post_ra>
// kernel: tpu_custom_call.1
= control target key start
LH: loop header
LB: loop body
LE: loop exit
PB: predicated region body
PF: predicated region fallthrough
CT: control target
= control target key end

     0   :  { %vm77_vm0 = vcmask 56320   ;;  %v397_v11 = vmov 0   ;;  %vm205_vm1 = vcmask 261120   ;;  %s652_s0 = inlined_call_operand.vmem [shape: f32[128,7], index: 0, kind: input, shape index: {}]   ;;  %s653_s2 = inlined_call_operand.vmem [shape: f32[40,1], index: 2, kind: input, shape index: {}]   ;;  %s654_s4 = inlined_call_operand.vmem [shape: f32[32,1], index: 4, kind: input, shape index: {}]   ;;  %s655_s6 = inlined_call_operand.vmem [shape: f32[8,1], index: 6, kind: input, shape index: {}]   ;;  %s656_s1 = inlined_call_operand.vmem [shape: f32[40,7], index: 1, kind: input, shape index: {}]   ;;  %s657_s3 = inlined_call_operand.vmem [shape: f32[32,32], index: 3, kind: input, shape index: {}]   ;;  %s658_s5 = inlined_call_operand.vmem [shape: f32[8,32], index: 5, kind: input, shape index: {}]   ;;  %s659_s7 = inlined_call_operand.vmem [shape: f32[128,7], index: 7, kind: output, shape index: {}]  }
   0x1   :  { %v41_v0 = vld [vmem:[%s652_s0 + $0x78] sm:$0xff]  ;;  %v40_v1 = vld [vmem:[%s652_s0 + $0x70] sm:$0xff]  ;;  %v39_v2 = vld [vmem:[%s652_s0 + $0x68] sm:$0xff]  ;;  %378 = vset.pattern.permute.xlu0 %v397_v11  ;;  %379 = vset.pattern.permute.xlu1 %v397_v11 }
   0x2   :  { %360 = vmatpush.xpose.msk.msra.mxu3 %vm77_vm0, %v41_v0  ;;  %334 = vmatpush.xpose.msk.msra.mxu0 %vm77_vm0, %v41_v0  ;;  %v38_v3 = vld [vmem:[%s652_s0 + $0x60] sm:$0xff]  ;;  %v37_v4 = vld [vmem:[%s652_s0 + $0x58] sm:$0xff]  ;;  %v36_v5 = vld [vmem:[%s652_s0 + $0x50] sm:$0xff] }
   0x3   :  { %v35_v6 = vld [vmem:[%s652_s0 + $0x48] sm:$0xff]  ;;  %v34_v7 = vld [vmem:[%s652_s0 + $0x40] sm:$0xff]  ;;  %v33_v8 = vld [vmem:[%s652_s0 + $0x38] sm:$0xff]  ;;  %380 = vset.pattern.permute.xlu2 %v397_v11 }
   0x4   :  { %v50_v9 = vld [vmem:[%s653_s2 + $0x18] sm:$0xff]  ;;  %v32_v10 = vld [vmem:[%s652_s0 + $0x30] sm:$0xff]  ;;  %v31_v12 = vld [vmem:[%s652_s0 + $0x28] sm:$0xff] }
   0x5   :  { %69 = vperm.xlu0 %378, %v50_v9   ;;  %v49_v13 = vld [vmem:[%s653_s2 + $0x10] sm:$0xff]  ;;  %v48_v14 = vld [vmem:[%s653_s2 + $0x8] sm:$0xff]  ;;  %v30_v15 = vld [vmem:[%s652_s0 + $0x20] sm:$0xff] }
   0x6   :  { %361 = vmatpush.xpose.msk.msra.mxu3 %vm77_vm0, %v40_v1  ;;  %335 = vmatpush.xpose.msk.msra.mxu0 %vm77_vm0, %v40_v1  ;;  %v29_v16 = vld [vmem:[%s652_s0 + $0x18] sm:$0xff]  ;;  %v182_v17 = vld [vmem:[%s654_s4 + $0x8] sm:$0xff]  ;;  %v47_v18 = vld [vmem:[%s653_s2] sm:$0xff] }
   0x7   :  { %59 = vperm.xlu1 %379, %v48_v14   ;;  %v28_v19 = vld [vmem:[%s652_s0 + $0x10] sm:$0xff]  ;;  %v27_v20 = vld [vmem:[%s652_s0 + $0x8] sm:$0xff]  ;;  %v181_v21 = vld [vmem:[%s654_s4] sm:$0xff] }
   0x8   :  { %v252_v22 = vld [vmem:[%s655_s6] sm:$0xff]  ;;  %v43_v24 = vld [vmem:[%s656_s1 + $0x8] sm:$0xff]  ;;  %v44_v26 = vld [vmem:[%s656_s1 + $0x10] sm:$0xff] }
   0x9   :  { %v26_v23 = vld [vmem:[%s652_s0] sm:$0xff]  ;;  %v45_v27 = vld [vmem:[%s656_s1 + $0x18] sm:$0xff]  ;;  %v183_v47 = vld [vmem:[%s654_s4 + $0x10] sm:$0xff] }
   0xa   :  { %362 = vmatpush.xpose.msk.msra.mxu3 %vm77_vm0, %v39_v2  ;;  %336 = vmatpush.xpose.msk.msra.mxu0 %vm77_vm0, %v39_v2  ;;  %v42_v25 = vld [vmem:[%s656_s1] sm:$0xff]  ;;  %v184_v42 = vld [vmem:[%s654_s4 + $0x18] sm:$0xff]  ;;  %v178_v48 = vld [vmem:[%s657_s3 + $0x8] sm:$0xff] }
   0xb   :  { %v46_v31 = vld [vmem:[%s656_s1 + $0x20] sm:$0xff]  ;;  %202 = vperm.xlu2 %380, %v184_v42   ;;  %v179_v50 = vld [vmem:[%s657_s3 + $0x10] sm:$0xff]  ;;  %v180_v51 = vld [vmem:[%s657_s3 + $0x18] sm:$0xff] }
   0xc   :  { %v177_v45 = vld [vmem:[%s657_s3] sm:$0xff] }
   0xd   :  { %64 = vperm.xlu0 %378, %v49_v13   ;;  %v51_v49 = vld [vmem:[%s653_s2 + $0x20] sm:$0xff] }
   0xe   :  { %363 = vmatpush.xpose.msk.msra.mxu3 %vm77_vm0, %v38_v3  ;;  %337 = vmatpush.xpose.msk.msra.mxu0 %vm77_vm0, %v38_v3  ;;  %v251_v3 = vld [vmem:[%s658_s5] sm:$0xff] }
   0xf   :  { %54 = vperm.xlu1 %379, %v47_v18  }
  0x12   :  { %364 = vmatpush.xpose.msk.msra.mxu3 %vm77_vm0, %v37_v4  ;;  %338 = vmatpush.xpose.msk.msra.mxu0 %vm77_vm0, %v37_v4 }
  0x13   :  { %197 = vperm.xlu2 %380, %v183_v47  }
  0x15   :  { %192 = vperm.xlu0 %378, %v182_v17  }
  0x16   :  { %365 = vmatpush.xpose.msk.msra.mxu3 %vm77_vm0, %v36_v5  ;;  %339 = vmatpush.xpose.msk.msra.mxu0 %vm77_vm0, %v36_v5 }
  0x17   :  { %187 = vperm.xlu1 %379, %v181_v21  }
  0x1a   :  { %366 = vmatpush.xpose.msk.msra.mxu3 %vm77_vm0, %v35_v6  ;;  %340 = vmatpush.xpose.msk.msra.mxu0 %vm77_vm0, %v35_v6 }
  0x1b   :  { %74 = vperm.xlu2 %380, %v51_v49  }
  0x1d   :  { %255 = vperm.xlu0 %378, %v252_v22  }
  0x1e   :  { %367 = vmatpush.xpose.msk.msra.mxu3 %vm77_vm0, %v34_v7  ;;  %341 = vmatpush.xpose.msk.msra.mxu0 %vm77_vm0, %v34_v7 }
  0x22   :  { %368 = vmatpush.xpose.msk.msra.mxu3 %vm77_vm0, %v33_v8  ;;  %342 = vmatpush.xpose.msk.msra.mxu0 %vm77_vm0, %v33_v8 }
  0x26   :  { %369 = vmatpush.xpose.msk.msra.mxu3 %vm77_vm0, %v32_v10  ;;  %343 = vmatpush.xpose.msk.msra.mxu0 %vm77_vm0, %v32_v10 }
  0x2a   :  { %370 = vmatpush.xpose.msk.msra.mxu3 %vm77_vm0, %v31_v12  ;;  %344 = vmatpush.xpose.msk.msra.mxu0 %vm77_vm0, %v31_v12 }
  0x2e   :  { %371 = vmatpush.xpose.msk.msra.mxu3 %vm77_vm0, %v30_v15  ;;  %345 = vmatpush.xpose.msk.msra.mxu0 %vm77_vm0, %v30_v15 }
  0x32   :  { %372 = vmatpush.xpose.msk.msra.mxu3 %vm77_vm0, %v29_v16  ;;  %346 = vmatpush.xpose.msk.msra.mxu0 %vm77_vm0, %v29_v16 }
  0x36   :  { %373 = vmatpush.xpose.msk.msra.mxu3 %vm77_vm0, %v28_v19  ;;  %347 = vmatpush.xpose.msk.msra.mxu0 %vm77_vm0, %v28_v19 }
  0x3a   :  { %374 = vmatpush.xpose.msk.msra.mxu3 %vm77_vm0, %v27_v20  ;;  %348 = vmatpush.xpose.msk.msra.mxu0 %vm77_vm0, %v27_v20 }
  0x3e   :  { %375 = vmatpush.xpose.msk.msra.mxu3 %vm77_vm0, %v26_v23  ;;  %349 = vmatpush.xpose.msk.msra.mxu0 %vm77_vm0, %v26_v23 }
  0x41   :  { %351 = vmatmul.msk.f32.vlgmr.msra.gmra.mxu3 %vm77_vm0, %v43_v24  ;;  %350 = vmatmul.msk.f32.vlgmr.msra.gmra.mxu0 %vm77_vm0, %v42_v25 }
  0x49   :  { %352 = vmatmul.msk.f32.gmra.mxu3 %vm77_vm0, %v44_v26 }
  0x51   :  { %353 = vmatmul.msk.f32.gmra.mxu3 %vm77_vm0, %v45_v27 }
  0x59   :  { %354 = vmatmul.msk.f32.gmra.mxu3 %vm77_vm0, %v46_v31 }
  0x65   :  { %v203_v54 = vpop.permute.xlu2 %202 }
  0x6d   :  { %v198_v56 = vpop.permute.xlu2 %197 }
  0x75   :  { %v75_v5 = vpop.permute.xlu2 %74 }
  0x77   :  { %v70_v29 = vpop.permute.xlu0 %69 }
  0x79   :  { %v60_v32 = vpop.permute.xlu1 %59 }
  0x7f   :  { %v65_v33 = vpop.permute.xlu0 %64 }
  0x81   :  { %v55_v39 = vpop.permute.xlu1 %54 }
  0x87   :  { %v193_v60 = vpop.permute.xlu0 %192 }
  0x89   :  { %v188_v62 = vpop.permute.xlu1 %187 }
  0x8f   :  { %v256_v7 = vpop.permute.xlu0 %255 }
  0xbe   :  { %v158_v37 = vpop.f32.mrf.mxu0 }
  0xbf   :  { %v159_v40 = vadd.f32 %v158_v37, %v55_v39 }
  0xc4   :  { %v161_v28 = vpop.f32.mrf.mxu3 }
  0xc5   :  { %v162_v38 = vadd.f32 %v161_v28, %v60_v32 }
  0xcc   :  { %v164_v30 = vpop.f32.mrf.mxu3 }
  0xcd   :  { %v165_v35 = vadd.f32 %v164_v30, %v65_v33 }
  0xd4   :  { %v167_v34 = vpop.f32.mrf.mxu3 }
  0xd5   :  { %v168_v36 = vadd.f32 %v167_v34, %v70_v29 }
  0xd7   :  { %381 = vtanh.f32 %v168_v36 }
  0xd8   :  { %383 = vtanh.f32 %v165_v35 }
  0xd9   :  { %385 = vtanh.f32 %v162_v38 }
  0xda   :  { %387 = vtanh.f32 %v159_v40 }
  0xdc   :  { %v170_v6 = vpop.f32.mrf.mxu3 }
  0xdd   :  { %v382_v41 = vpop.eup %381  ;;  %v171_v9 = vadd.f32 %v170_v6, %v75_v5 }
  0xde   :  { %230 = vmatpush.msra.mxu1 %v382_v41  ;;  %v384_v43 = vpop.eup %383 }
  0xdf   :  { %v386_v44 = vpop.eup %385 }
  0xe0   :  { %231 = vmatpush.msra.mxu1 %v384_v43  ;;  %v388_v46 = vpop.eup %387 }
  0xe2   :  { %232 = vmatpush.msra.mxu1 %v386_v44 }
  0xe4   :  { %233 = vmatpush.msra.mxu1 %v388_v46 }
  0xe5   :  { %355 = vmatmul.msk.f32.vlgmr.msra.gmra.mxu1 %vm205_vm1, %v177_v45 }
  0xed   :  { %356 = vmatmul.msk.f32.gmra.mxu1 %vm205_vm1, %v178_v48 }
  0xf5   :  { %357 = vmatmul.msk.f32.gmra.mxu1 %vm205_vm1, %v179_v50 }
  0xfd   :  { %358 = vmatmul.msk.f32.gmra.mxu1 %vm205_vm1, %v180_v51 }
 0x162   :  { %v235_v52 = vpop.f32.mrf.mxu1 }
 0x163   :  { %v236_v63 = vadd.f32 %v235_v52, %v188_v62 }
 0x16a   :  { %v238_v53 = vpop.f32.mrf.mxu1 }
 0x16b   :  { %v239_v61 = vadd.f32 %v238_v53, %v193_v60 }
 0x172   :  { %v241_v55 = vpop.f32.mrf.mxu1 }
 0x173   :  { %v242_v58 = vadd.f32 %v241_v55, %v198_v56 }
 0x17a   :  { %v244_v57 = vpop.f32.mrf.mxu1 }
 0x17b   :  { %v245_v59 = vadd.f32 %v244_v57, %v203_v54 }
 0x17d   :  { %389 = vtanh.f32 %v245_v59 }
 0x17e   :  { %391 = vtanh.f32 %v242_v58 }
 0x17f   :  { %393 = vtanh.f32 %v239_v61 }
 0x180   :  { %395 = vtanh.f32 %v236_v63 }
 0x183   :  { %v390_v0 = vpop.eup %389 }
 0x184   :  { %273 = vmatpush.msra.mxu2 %v390_v0  ;;  %v392_v1 = vpop.eup %391 }
 0x185   :  { %v394_v2 = vpop.eup %393 }
 0x186   :  { %274 = vmatpush.msra.mxu2 %v392_v1  ;;  %v396_v4 = vpop.eup %395 }
 0x188   :  { %275 = vmatpush.msra.mxu2 %v394_v2 }
 0x18a   :  { %276 = vmatpush.msra.mxu2 %v396_v4 }
 0x18b   :  { %359 = vmatmul.msk.f32.vlgmr.msra.gmra.mxu2 %vm205_vm1, %v251_v3 }
 0x20e   :  { %v278_v8 = vpop.f32.mrf.mxu2 }
 0x20f   :  { %v279_v10 = vadd.f32 %v278_v8, %v256_v7 }
 0x211   :  { %v281_v11 = vadd.f32 %v279_v10, %v171_v9 }
 0x213   :  { %282 = vxpose.xlu1.b32.start.end [1/1] (short) %v281_v11, 128 }
 0x2b7   :  { %v298_v12 = vpop.trf.xlu1 }
 0x2b8   :  { %314 = vst.msk [vmem:[%s659_s7] sm:$0xff] %vm77_vm0, %v298_v12 }
 0x2bf   :  { %v299_v13 = vpop.trf.xlu1 }
 0x2c0   :  { %315 = vst.msk [vmem:[%s659_s7 + $0x8] sm:$0xff] %vm77_vm0, %v299_v13 }
 0x2c7   :  { %v300_v14 = vpop.trf.xlu1 }
 0x2c8   :  { %316 = vst.msk [vmem:[%s659_s7 + $0x10] sm:$0xff] %vm77_vm0, %v300_v14 }
 0x2cf   :  { %v301_v15 = vpop.trf.xlu1 }
 0x2d0   :  { %317 = vst.msk [vmem:[%s659_s7 + $0x18] sm:$0xff] %vm77_vm0, %v301_v15 }
 0x2d7   :  { %v302_v16 = vpop.trf.xlu1 }
 0x2d8   :  { %318 = vst.msk [vmem:[%s659_s7 + $0x20] sm:$0xff] %vm77_vm0, %v302_v16 }
 0x2df   :  { %v303_v17 = vpop.trf.xlu1 }
 0x2e0   :  { %319 = vst.msk [vmem:[%s659_s7 + $0x28] sm:$0xff] %vm77_vm0, %v303_v17 }
 0x2e7   :  { %v304_v18 = vpop.trf.xlu1 }
 0x2e8   :  { %320 = vst.msk [vmem:[%s659_s7 + $0x30] sm:$0xff] %vm77_vm0, %v304_v18 }
 0x2ef   :  { %v305_v19 = vpop.trf.xlu1 }
 0x2f0   :  { %321 = vst.msk [vmem:[%s659_s7 + $0x38] sm:$0xff] %vm77_vm0, %v305_v19 }
 0x2f7   :  { %v306_v20 = vpop.trf.xlu1 }
 0x2f8   :  { %322 = vst.msk [vmem:[%s659_s7 + $0x40] sm:$0xff] %vm77_vm0, %v306_v20 }
 0x2ff   :  { %v307_v21 = vpop.trf.xlu1 }
 0x300   :  { %323 = vst.msk [vmem:[%s659_s7 + $0x48] sm:$0xff] %vm77_vm0, %v307_v21 }
 0x307   :  { %v308_v22 = vpop.trf.xlu1 }
 0x308   :  { %324 = vst.msk [vmem:[%s659_s7 + $0x50] sm:$0xff] %vm77_vm0, %v308_v22 }
 0x30f   :  { %v309_v23 = vpop.trf.xlu1 }
 0x310   :  { %325 = vst.msk [vmem:[%s659_s7 + $0x58] sm:$0xff] %vm77_vm0, %v309_v23 }
 0x317   :  { %v310_v24 = vpop.trf.xlu1 }
 0x318   :  { %326 = vst.msk [vmem:[%s659_s7 + $0x60] sm:$0xff] %vm77_vm0, %v310_v24 }
 0x31f   :  { %v311_v25 = vpop.trf.xlu1 }
 0x320   :  { %327 = vst.msk [vmem:[%s659_s7 + $0x68] sm:$0xff] %vm77_vm0, %v311_v25 }
 0x327   :  { %v312_v26 = vpop.trf.xlu1 }
 0x328   :  { %328 = vst.msk [vmem:[%s659_s7 + $0x70] sm:$0xff] %vm77_vm0, %v312_v26 }
 0x32f   :  { %v313_v27 = vpop.trf.xlu1 }
 0x330   :  { %329 = vst.msk [vmem:[%s659_s7 + $0x78] sm:$0xff] %vm77_vm0, %v313_v27 }

</bundles_post_ra>
